<compile_context>
chip_gen: v5e
topology: v5e:2x2
jax: 0.10.0
libtpu: 0.0.40
codegen_flags: <defaults>
</compile_context>

<pallas_src>
import functools

import jax
import jax.numpy as jnp
from jax.experimental import pallas as pl
from jax.experimental.pallas import tpu as pltpu


# ---------------------------------------------------------------------------
# Kernel
# ---------------------------------------------------------------------------
def _moe_expert_kernel(ids_ref, cnt_ref,                 # scalar-prefetch (SMEM)
                       x_ref, rw_ref, w1_ref, b1_ref, w2_ref,
                       o_ref, acc_ref, *, fold_rw_into_h):
    i = pl.program_id(0)          # token tile
    f = pl.program_id(1)          # d_ff chunk
    k = pl.program_id(2)          # compressed (active) expert step
    n_f = pl.num_programs(1)
    n_k = pl.num_programs(2)

    # Zero the accumulator at the start of each token tile's reduction.
    @pl.when(jnp.logical_and(f == 0, k == 0))
    def _init():
        acc_ref[...] = jnp.zeros_like(acc_ref)

    # Only the first cnt[i] steps of the expert axis carry real experts; the
    # remaining (padded) steps repeat the previous expert id, so their weight
    # DMAs are elided by the pipeliner and their compute is skipped here.
    @pl.when(k < cnt_ref[i])
    def _compute():
        # (tm, d_model) @ (d_model, tff) -> f32
        h = jnp.dot(x_ref[...], w1_ref[...],
                    preferred_element_type=jnp.float32) + b1_ref[...]
        h = jnp.maximum(h, 0.0)
        rw = rw_ref[...]                                  # (tm, 1) f32
        if fold_rw_into_h:
            # Scale the (tm, tff) activations (cheaper when tff < d_model).
            h = (h * rw).astype(w2_ref.dtype)
            acc_ref[...] += jnp.dot(h, w2_ref[...],
                                    preferred_element_type=jnp.float32)
        else:
            part = jnp.dot(h.astype(w2_ref.dtype), w2_ref[...],
                           preferred_element_type=jnp.float32)
            acc_ref[...] += rw * part

    @pl.when(jnp.logical_and(f == n_f - 1, k == n_k - 1))
    def _finalize():
        o_ref[...] = acc_ref[...].astype(o_ref.dtype)


# ---------------------------------------------------------------------------
# Host-side helpers
# ---------------------------------------------------------------------------
def _round_up(x, m):
    return ((x + m - 1) // m) * m


def _device_vmem_budget():
    """~75% of physical VMEM: ~96 MiB on v5e/v6e (128 MiB), ~48 MiB on v7x."""
    try:
        phys = int(pltpu.get_tpu_info().vmem_capacity_bytes)
    except Exception:
        phys = 64 << 20          # conservative fallback (v7x-safe)
    return (phys * 3) // 4


def _size_tm(budget, d_model, tff, out_bytes, w_buffers, tm_target, tokens):
    """Pick the token tile from the VMEM budget (bigger tm => less weight
    re-streaming), aligned to 256/128/16 and clamped by the token count."""
    wb = 2                                             # bf16 weights/activations
    n_buf = max(2, int(w_buffers))
    fixed = 2 * d_model * tff * wb * n_buf             # W1 + W2 buffers
    fixed += tff * 4 * 2 + (1 << 20)                   # b1 buffers + slack
    per_token = d_model * (2 * wb + 2 * out_bytes + 4) + 4 * 2  # x, out, acc, rw
    avail = max(budget - fixed, 0)
    tm_cap = max(16, avail // per_token)
    for a in (256, 128, 16):
        if tm_cap >= a:
            tm_cap = (tm_cap // a) * a
            break
    tm = min(int(tm_target), int(tm_cap), _round_up(tokens, 16))
    return max(16, (tm // 16) * 16)


def _routing_weights(x_flat, wg, topk, temperature):
    """(tokens, E) routing weights in f32; exact argmax / lax.top_k semantics."""
    logits = jnp.dot(x_flat, wg, preferred_element_type=jnp.float32) / temperature
    num_experts = wg.shape[-1]
    if topk == 1:
        idx = jnp.argmax(logits, axis=-1)
        return jax.nn.one_hot(idx, num_experts, dtype=jnp.float32)
    probs = jax.nn.softmax(logits, axis=-1)
    tp, ti = jax.lax.top_k(probs, topk)
    onehot = jax.nn.one_hot(ti, num_experts, dtype=jnp.float32)      # (T, k, E)
    return jnp.sum(onehot * tp[..., None], axis=1)                   # (T, E)


# ---------------------------------------------------------------------------
# Public wrapper
# ---------------------------------------------------------------------------
def moe_feed_forward(x, params, *, topk=1, temperature=1.0,
                     tm=None, tff=None, compute_dtype=jnp.bfloat16,
                     weight_buffers=3):
    """x: (seq_len, batch, d_model) -> (seq_len, batch, d_model)."""
    s, b, d_model = x.shape
    tokens = s * b
    wg, w1, b1, w2, b2 = (params["wg"], params["w1"], params["b1"],
                          params["w2"], params["b2"])
    num_experts, _, d_ff = w1.shape
    E = num_experts

    x_flat = x.reshape(tokens, d_model)

    # 1) Routing in plain JAX (f32), identical to the reference semantics.
    rw = _routing_weights(x_flat, wg, topk, float(temperature))      # (T, E)

    # 2) d_ff chunking: pad d_ff up to a multiple of the chunk; never fall
    #    back to a full-width W1/W2 block (v7x 64 MiB VMEM safety).
    tff_target = int(tff) if tff is not None else 512
    tff_target = max(128, (tff_target // 128) * 128)
    if d_ff <= tff_target:
        tff_eff, d_ff_pad = d_ff, d_ff
    else:
        tff_eff = tff_target
        d_ff_pad = _round_up(d_ff, tff_eff)
    num_fchunks = d_ff_pad // tff_eff

    # 3) Token tile + VMEM limit sized from the device's physical VMEM.
    out_bytes = jnp.dtype(x.dtype).itemsize
    vmem_budget = _device_vmem_budget()
    tm_target = int(tm) if tm is not None else 1024
    tm_eff = _size_tm(vmem_budget, d_model, tff_eff, out_bytes,
                      weight_buffers, tm_target, tokens)
    tokens_pad = _round_up(tokens, tm_eff)
    num_tiles = tokens_pad // tm_eff
    pad = tokens_pad - tokens
    if pad:
        x_flat = jnp.pad(x_flat, ((0, pad), (0, 0)))
        rw_pad = jnp.pad(rw, ((0, pad), (0, 0)))     # padded tokens route nowhere
    else:
        rw_pad = rw

    # 4) Compressed active-expert schedule per tile (scalar-prefetch tables).
    #    Positions >= count repeat the last active expert id so consecutive
    #    grid steps keep the same weight block index -> DMA elided.
    rw_tiles = rw_pad.reshape(num_tiles, tm_eff, E)
    active = rw_tiles.max(axis=1) > 0.0                               # (tiles, E)
    counts = active.sum(axis=-1).astype(jnp.int32)                    # (tiles,)
    order = jnp.argsort(jnp.where(active, 0, 1).astype(jnp.int32), axis=-1)
    pos = jnp.arange(E, dtype=jnp.int32)[None, :]
    clamp = jnp.minimum(pos, jnp.maximum(counts[:, None] - 1, 0))
    expert_ids = jnp.take_along_axis(order, clamp, axis=-1).astype(jnp.int32)
    expert_ids = expert_ids.reshape(-1)                               # 1-D SMEM

    # 5) Kernel operand layouts.
    rw_t = jnp.transpose(rw_pad).reshape(E, tokens_pad, 1)            # (E, T, 1)
    x_c = x_flat.astype(compute_dtype)
    if d_ff_pad != d_ff:
        pd = d_ff_pad - d_ff
        w1 = jnp.pad(w1, ((0, 0), (0, 0), (0, pd)))
        b1 = jnp.pad(b1, ((0, 0), (0, 0), (0, pd)))
        w2 = jnp.pad(w2, ((0, 0), (0, pd), (0, 0)))
    w1_c = w1.astype(compute_dtype)
    w2_c = w2.astype(compute_dtype)
    b1_f = b1.astype(jnp.float32)

    fold = tff_eff < d_model
    kernel = functools.partial(_moe_expert_kernel, fold_rw_into_h=fold)

    def _weight_spec(shape, index_map, buffers):
        # Deeper pipelining on the dominant (weight) DMA streams, with a
        # graceful fallback if pipeline_mode / pl.Buffered is unavailable.
        if buffers and buffers != 2:
            try:
                return pl.BlockSpec(shape, index_map,
                                    pipeline_mode=pl.Buffered(int(buffers)))
            except Exception:
                pass
        return pl.BlockSpec(shape, index_map)

    def _run(buffers):
        grid_spec = pltpu.PrefetchScalarGridSpec(
            num_scalar_prefetch=2,
            grid=(num_tiles, num_fchunks, E),
            in_specs=[
                # x tile: fetched once per token tile, reused across (f, k).
                pl.BlockSpec((tm_eff, d_model),
                             lambda i, f, k, ids, cnt: (i, 0)),
                # routing-weight column of the k-th active expert: (tm, 1).
                pl.BlockSpec((None, tm_eff, 1),
                             lambda i, f, k, ids, cnt: (ids[i * E + k], i, 0)),
                # W1[e][:, f-chunk]
                _weight_spec((None, d_model, tff_eff),
                             lambda i, f, k, ids, cnt: (ids[i * E + k], 0, f),
                             buffers),
                # b1[e][f-chunk]
                pl.BlockSpec((None, 1, tff_eff),
                             lambda i, f, k, ids, cnt: (ids[i * E + k], 0, f)),
                # W2[e][f-chunk, :]
                _weight_spec((None, tff_eff, d_model),
                             lambda i, f, k, ids, cnt: (ids[i * E + k], f, 0),
                             buffers),
            ],
            out_specs=pl.BlockSpec((tm_eff, d_model),
                                   lambda i, f, k, ids, cnt: (i, 0)),
            scratch_shapes=[pltpu.VMEM((tm_eff, d_model), jnp.float32)],
        )
        return pl.pallas_call(
            kernel,
            out_shape=jax.ShapeDtypeStruct((tokens_pad, d_model), x.dtype),
            grid_spec=grid_spec,
            compiler_params=pltpu.CompilerParams(
                # token tiles are independent -> megacore / 2-TC split on v7x;
                # expert & d_ff axes are reductions into the VMEM accumulator.
                dimension_semantics=("parallel", "arbitrary", "arbitrary"),
                vmem_limit_bytes=int(vmem_budget),
            ),
        )(expert_ids, counts, x_c, rw_t, w1_c, b1_f, w2_c)

    try:
        y_core = _run(weight_buffers)
    except Exception:
        if weight_buffers != 2:
            y_core = _run(2)      # fall back to default double-buffering
        else:
            raise

    # 6) Expert output bias applied outside the kernel: sum_e rw[:, e] * b2[e].
    b2_mat = b2.reshape(E, d_model).astype(jnp.float32)
    y_bias = jnp.dot(rw, b2_mat, preferred_element_type=jnp.float32)
    y = (y_core[:tokens].astype(jnp.float32) + y_bias).astype(x.dtype)
    return y.reshape(s, b, d_model)


# ---------------------------------------------------------------------------
# Pure-JAX reference (mirrors the PyTorch forward; dropout = identity)
# ---------------------------------------------------------------------------
def moe_reference(x, params, *, topk=1, temperature=1.0,
                  compute_dtype=jnp.float32):
    s, b, d_model = x.shape
    xf = x.reshape(s * b, d_model)
    logits = jnp.dot(xf, params["wg"],
                     preferred_element_type=jnp.float32) / float(temperature)
    num_experts = params["w1"].shape[0]
    xc = xf.astype(compute_dtype)
    outs = []
    for e in range(num_experts):
        h = jnp.maximum(
            jnp.dot(xc, params["w1"][e].astype(compute_dtype),
                    preferred_element_type=jnp.float32) + params["b1"][e, 0],
            0.0)
        outs.append(
            jnp.dot(h.astype(compute_dtype),
                    params["w2"][e].astype(compute_dtype),
                    preferred_element_type=jnp.float32) + params["b2"][e, 0])
    all_out = jnp.stack(outs, axis=1)                       # (tokens, E, d_model)
    if topk == 1:
        idx = jnp.argmax(logits, axis=-1)
        yf = jnp.take_along_axis(all_out, idx[:, None, None], axis=1)[:, 0]
    else:
        probs = jax.nn.softmax(logits, axis=-1)
        tp, ti = jax.lax.top_k(probs, topk)
        g = jnp.take_along_axis(all_out, ti[:, :, None], axis=1)
        yf = jnp.sum(g * tp[:, :, None], axis=1)
    return yf.reshape(s, b, d_model).astype(x.dtype)


def init_params(key, d_model, d_ff, num_experts):
    ks = jax.random.split(key, 5)
    scale1 = 1.0 / (d_model ** 0.5)
    scale2 = 1.0 / (d_ff ** 0.5)
    return {
        "wg": jax.random.normal(ks[0], (d_model, num_experts), jnp.float32) * scale1,
        "w1": jax.random.normal(ks[1], (num_experts, d_model, d_ff), jnp.float32) * scale1,
        "b1": jax.random.normal(ks[2], (num_experts, 1, d_ff), jnp.float32) * 0.01,
        "w2": jax.random.normal(ks[3], (num_experts, d_ff, d_model), jnp.float32) * scale2,
        "b2": jax.random.normal(ks[4], (num_experts, 1, d_model), jnp.float32) * 0.01,
    }


if __name__ == "__main__":
    key = jax.random.PRNGKey(0)
    k1, k2, k3, k4, k5, k6 = jax.random.split(key, 6)

    # --- Test 1: single token tile, single d_ff chunk, top-1 and top-2 ------
    seq_len, batch, d_model, d_ff, num_experts = 8, 2, 32, 64, 4
    x = jax.random.normal(k1, (seq_len, batch, d_model), jnp.float32)
    params = init_params(k2, d_model, d_ff, num_experts)

    y1 = jax.block_until_ready(moe_feed_forward(x, params, topk=1))
    r1 = moe_reference(x, params, topk=1, compute_dtype=jnp.bfloat16)
    assert y1.shape == x.shape
    assert jnp.allclose(y1, r1, rtol=2e-2, atol=2e-2), float(jnp.max(jnp.abs(y1 - r1)))

    y2 = jax.block_until_ready(moe_feed_forward(x, params, topk=2))
    r2 = moe_reference(x, params, topk=2, compute_dtype=jnp.bfloat16)
    assert jnp.allclose(y2, r2, rtol=2e-2, atol=2e-2), float(jnp.max(jnp.abs(y2 - r2)))

    # --- Test 2: token padding, multiple tiles, d_ff chunking + d_ff padding,
    #             compressed active-expert skip ------------------------------
    seq_len, batch, d_model, d_ff, num_experts = 9, 4, 32, 320, 4
    x2 = jax.random.normal(k3, (seq_len, batch, d_model), jnp.float32)
    params2 = init_params(k4, d_model, d_ff, num_experts)
    y3 = jax.block_until_ready(
        moe_feed_forward(x2, params2, topk=2, tm=16, tff=128))
    r3 = moe_reference(x2, params2, topk=2, compute_dtype=jnp.bfloat16)
    assert y3.shape == x2.shape
    assert jnp.allclose(y3, r3, rtol=2e-2, atol=2e-2), float(jnp.max(jnp.abs(y3 - r3)))

    # --- Test 3: tff < d_model -> routing weight folded into activations ----
    seq_len, batch, d_model, d_ff, num_experts = 4, 2, 64, 32, 4
    x3 = jax.random.normal(k5, (seq_len, batch, d_model), jnp.float32)
    params3 = init_params(k6, d_model, d_ff, num_experts)
    y4 = jax.block_until_ready(moe_feed_forward(x3, params3, topk=2))
    r4 = moe_reference(x3, params3, topk=2, compute_dtype=jnp.bfloat16)
    assert y4.shape == x3.shape
    assert jnp.allclose(y4, r4, rtol=2e-2, atol=2e-2), float(jnp.max(jnp.abs(y4 - r4)))

    print("KERNEL_OK")
</pallas_src>

<mosaic_0001>
module attributes {stable_mosaic.version = 11 : i64} {
  func.func @_moe_expert_kernel(%arg0: i32, %arg1: i32, %arg2: i32, %arg3: memref<4xi32, #tpu.memory_space<smem>>, %arg4: memref<1xi32, #tpu.memory_space<smem>>, %arg5: memref<16x32xbf16, #tpu.memory_space<vmem>>, %arg6: memref<1x16x1xf32, #tpu.memory_space<vmem>>, %arg7: memref<1x32x64xbf16, #tpu.memory_space<vmem>>, %arg8: memref<1x1x64xf32, #tpu.memory_space<vmem>>, %arg9: memref<1x64x32xbf16, #tpu.memory_space<vmem>>, %arg10: memref<16x32xf32, #tpu.memory_space<vmem>>, %arg11: memref<16x32xf32, #tpu.memory_space<vmem>>) attributes {dimension_semantics = [#tpu.dimension_semantics<parallel>, #tpu.dimension_semantics<arbitrary>, #tpu.dimension_semantics<arbitrary>], iteration_bounds = array<i64: 1, 1, 4>, scalar_prefetch = 2 : i64, scratch_operands = 1 : i64, tpu.core_type = #tpu.core_type<tc>, window_params = [{transform_indices = @transform_0, window_bounds = array<i64: 16, 32>}, {transform_indices = @transform_1, window_bounds = array<i64: 1, 16, 1>}, {transform_indices = @transform_2, window_bounds = array<i64: 1, 32, 64>}, {transform_indices = @transform_3, window_bounds = array<i64: 1, 1, 64>}, {transform_indices = @transform_4, window_bounds = array<i64: 1, 64, 32>}, {transform_indices = @transform_5, window_bounds = array<i64: 16, 32>}]} {
    %c0_i32 = arith.constant 0 : i32
    %0 = arith.cmpi eq, %arg1, %c0_i32 : i32
    %c0_i32_0 = arith.constant 0 : i32
    %1 = arith.cmpi eq, %arg2, %c0_i32_0 : i32
    %2 = arith.andi %0, %1 : i1
    %3 = arith.extui %2 : i1 to i32
    %c0_i32_1 = arith.constant 0 : i32
    %4 = arith.cmpi ne, %3, %c0_i32_1 : i32
    scf.if %4 {
      %cst = arith.constant 0.000000e+00 : f32
      %15 = vector.broadcast %cst : f32 to vector<16x32xf32>
      %c0 = arith.constant 0 : index
      %c0_5 = arith.constant 0 : index
      %16 = vector.load %arg11[%c0, %c0_5] : memref<16x32xf32, #tpu.memory_space<vmem>>, vector<16x32xf32>
      tpu.vector_store %arg11[%c0, %c0_5], %15 {strides = array<i32>} : memref<16x32xf32, #tpu.memory_space<vmem>>, vector<16x32xf32>,
    } else {
    }
    %5 = arith.index_cast %arg0 : i32 to index
    %6 = memref.load %arg4[%5] : memref<1xi32, #tpu.memory_space<smem>>
    %7 = arith.cmpi slt, %arg2, %6 : i32
    %8 = arith.extui %7 : i1 to i32
    %c0_i32_2 = arith.constant 0 : i32
    %9 = arith.cmpi ne, %8, %c0_i32_2 : i32
    scf.if %9 {
      %c0 = arith.constant 0 : index
      %c0_5 = arith.constant 0 : index
      %15 = vector.load %arg5[%c0, %c0_5] : memref<16x32xbf16, #tpu.memory_space<vmem>>, vector<16x32xbf16>
      %c0_6 = arith.constant 0 : index
      %c0_7 = arith.constant 0 : index
      %c0_8 = arith.constant 0 : index
      %16 = vector.load %arg7[%c0_6, %c0_7, %c0_8] : memref<1x32x64xbf16, #tpu.memory_space<vmem>>, vector<1x32x64xbf16>
      %17 = vector.shape_cast %16 : vector<1x32x64xbf16> to vector<32x64xbf16>
      %cst = arith.constant dense<0.000000e+00> : vector<16x64xf32>
      %18 = tpu.matmul %15, %17, %cst {dimension_numbers = #tpu.dot_dimension_numbers<[1], [0], [0], [1], [0, 0, 1, 1], [], []>} : vector<16x32xbf16>, vector<32x64xbf16>, vector<16x64xf32> -> vector<16x64xf32>
      %c0_9 = arith.constant 0 : index
      %c0_10 = arith.constant 0 : index
      %c0_11 = arith.constant 0 : index
      %19 = vector.load %arg8[%c0_9, %c0_10, %c0_11] : memref<1x1x64xf32, #tpu.memory_space<vmem>>, vector<1x1x64xf32>
      %20 = vector.shape_cast %19 : vector<1x1x64xf32> to vector<1x64xf32>
      %21 = vector.broadcast %20 : vector<1x64xf32> to vector<16x64xf32>
      %22 = arith.addf %18, %21 : vector<16x64xf32>
      %cst_12 = arith.constant 0.000000e+00 : f32
      %23 = vector.broadcast %cst_12 : f32 to vector<16x64xf32>
      %24 = arith.maximumf %22, %23 : vector<16x64xf32>
      %c0_13 = arith.constant 0 : index
      %c0_14 = arith.constant 0 : index
      %c0_15 = arith.constant 0 : index
      %25 = vector.load %arg6[%c0_13, %c0_14, %c0_15] : memref<1x16x1xf32, #tpu.memory_space<vmem>>, vector<1x16x1xf32>
      %26 = vector.shape_cast %25 : vector<1x16x1xf32> to vector<16x1xf32>
      %27 = arith.truncf %24 : vector<16x64xf32> to vector<16x64xbf16>
      %c0_16 = arith.constant 0 : index
      %c0_17 = arith.constant 0 : index
      %c0_18 = arith.constant 0 : index
      %28 = vector.load %arg9[%c0_16, %c0_17, %c0_18] : memref<1x64x32xbf16, #tpu.memory_space<vmem>>, vector<1x64x32xbf16>
      %29 = vector.shape_cast %28 : vector<1x64x32xbf16> to vector<64x32xbf16>
      %cst_19 = arith.constant dense<0.000000e+00> : vector<16x32xf32>
      %30 = tpu.matmul %27, %29, %cst_19 {dimension_numbers = #tpu.dot_dimension_numbers<[1], [0], [0], [1], [0, 0, 1, 1], [], []>} : vector<16x64xbf16>, vector<64x32xbf16>, vector<16x32xf32> -> vector<16x32xf32>
      %c0_20 = arith.constant 0 : index
      %c0_21 = arith.constant 0 : index
      %31 = vector.load %arg11[%c0_20, %c0_21] : memref<16x32xf32, #tpu.memory_space<vmem>>, vector<16x32xf32>
      %32 = vector.broadcast %26 : vector<16x1xf32> to vector<16x32xf32>
      %33 = arith.mulf %32, %30 : vector<16x32xf32>
      %34 = arith.addf %31, %33 : vector<16x32xf32>
      %c0_22 = arith.constant 0 : index
      %c0_23 = arith.constant 0 : index
      %35 = vector.load %arg11[%c0_22, %c0_23] : memref<16x32xf32, #tpu.memory_space<vmem>>, vector<16x32xf32>
      tpu.vector_store %arg11[%c0_22, %c0_23], %34 {strides = array<i32>} : memref<16x32xf32, #tpu.memory_space<vmem>>, vector<16x32xf32>,
    } else {
    }
    %c0_i32_3 = arith.constant 0 : i32
    %10 = arith.cmpi eq, %arg1, %c0_i32_3 : i32
    %c3_i32 = arith.constant 3 : i32
    %11 = arith.cmpi eq, %arg2, %c3_i32 : i32
    %12 = arith.andi %10, %11 : i1
    %13 = arith.extui %12 : i1 to i32
    %c0_i32_4 = arith.constant 0 : i32
    %14 = arith.cmpi ne, %13, %c0_i32_4 : i32
    scf.if %14 {
      %c0 = arith.constant 0 : index
      %c0_5 = arith.constant 0 : index
      %15 = vector.load %arg11[%c0, %c0_5] : memref<16x32xf32, #tpu.memory_space<vmem>>, vector<16x32xf32>
      %c0_6 = arith.constant 0 : index
      %c0_7 = arith.constant 0 : index
      %16 = vector.load %arg10[%c0_6, %c0_7] : memref<16x32xf32, #tpu.memory_space<vmem>>, vector<16x32xf32>
      tpu.vector_store %arg10[%c0_6, %c0_7], %15 {strides = array<i32>} : memref<16x32xf32, #tpu.memory_space<vmem>>, vector<16x32xf32>,
    } else {
    }
    return
  }
  func.func @transform_0(%arg0: i32, %arg1: i32, %arg2: i32, %arg3: memref<4xi32, #tpu.memory_space<smem>>, %arg4: memref<1xi32, #tpu.memory_space<smem>>) -> (i32, i32) {
    %c0_i32 = arith.constant 0 : i32
    %c0_i32_0 = arith.constant 0 : i32
    return %arg0, %c0_i32 : i32, i32
  }
  func.func @transform_1(%arg0: i32, %arg1: i32, %arg2: i32, %arg3: memref<4xi32, #tpu.memory_space<smem>>, %arg4: memref<1xi32, #tpu.memory_space<smem>>) -> (i32, i32, i32) {
    %c4_i32 = arith.constant 4 : i32
    %0 = arith.muli %arg0, %c4_i32 : i32
    %1 = arith.addi %0, %arg2 : i32
    %2 = arith.index_cast %1 : i32 to index
    %3 = memref.load %arg3[%2] : memref<4xi32, #tpu.memory_space<smem>>
    %c0_i32 = arith.constant 0 : i32
    %c0_i32_0 = arith.constant 0 : i32
    return %3, %arg0, %c0_i32 : i32, i32, i32
  }
  func.func @transform_2(%arg0: i32, %arg1: i32, %arg2: i32, %arg3: memref<4xi32, #tpu.memory_space<smem>>, %arg4: memref<1xi32, #tpu.memory_space<smem>>) -> (i32, i32, i32) {
    %c4_i32 = arith.constant 4 : i32
    %0 = arith.muli %arg0, %c4_i32 : i32
    %1 = arith.addi %0, %arg2 : i32
    %2 = arith.index_cast %1 : i32 to index
    %3 = memref.load %arg3[%2] : memref<4xi32, #tpu.memory_space<smem>>
    %c0_i32 = arith.constant 0 : i32
    %c0_i32_0 = arith.constant 0 : i32
    return %3, %c0_i32, %arg1 : i32, i32, i32
  }
  func.func @transform_3(%arg0: i32, %arg1: i32, %arg2: i32, %arg3: memref<4xi32, #tpu.memory_space<smem>>, %arg4: memref<1xi32, #tpu.memory_space<smem>>) -> (i32, i32, i32) {
    %c4_i32 = arith.constant 4 : i32
    %0 = arith.muli %arg0, %c4_i32 : i32
    %1 = arith.addi %0, %arg2 : i32
    %2 = arith.index_cast %1 : i32 to index
    %3 = memref.load %arg3[%2] : memref<4xi32, #tpu.memory_space<smem>>
    %c0_i32 = arith.constant 0 : i32
    %c0_i32_0 = arith.constant 0 : i32
    return %3, %c0_i32, %arg1 : i32, i32, i32
  }
  func.func @transform_4(%arg0: i32, %arg1: i32, %arg2: i32, %arg3: memref<4xi32, #tpu.memory_space<smem>>, %arg4: memref<1xi32, #tpu.memory_space<smem>>) -> (i32, i32, i32) {
    %c4_i32 = arith.constant 4 : i32
    %0 = arith.muli %arg0, %c4_i32 : i32
    %1 = arith.addi %0, %arg2 : i32
    %2 = arith.index_cast %1 : i32 to index
    %3 = memref.load %arg3[%2] : memref<4xi32, #tpu.memory_space<smem>>
    %c0_i32 = arith.constant 0 : i32
    %c0_i32_0 = arith.constant 0 : i32
    return %3, %arg1, %c0_i32 : i32, i32, i32
  }
  func.func @transform_5(%arg0: i32, %arg1: i32, %arg2: i32, %arg3: memref<4xi32, #tpu.memory_space<smem>>, %arg4: memref<1xi32, #tpu.memory_space<smem>>) -> (i32, i32) {
    %c0_i32 = arith.constant 0 : i32
    %c0_i32_0 = arith.constant 0 : i32
    return %arg0, %c0_i32 : i32, i32
  }
}

</mosaic_0001>

<bundles_post_ra>
// kernel: tpu_custom_call.1
= control target key start
LH: loop header
LB: loop body
LE: loop exit
PB: predicated region body
PF: predicated region fallthrough
CT: control target
= control target key end

     0   :  { %s908_s29 = smov [#allocation4]   ;;  %s1034_s0 = inlined_call_operand.vmem [shape: s32[4], index: 0, kind: input, shape index: {}]   ;;  %s1035_s1 = inlined_call_operand.<no memory space> [shape: s32[1], index: 1, kind: input, shape index: {}]   ;;  %s1036_s2 = inlined_call_operand.vmem [shape: bf16[16,32], index: 2, kind: input, shape index: {}]   ;;  %s1037_s3 = inlined_call_operand.vmem [shape: f32[4,16,1], index: 3, kind: input, shape index: {}]   ;;  %s1038_s4 = inlined_call_operand.vmem [shape: bf16[4,32,64], index: 4, kind: input, shape index: {}]   ;;  %s1039_s5 = inlined_call_operand.vmem [shape: f32[4,1,64], index: 5, kind: input, shape index: {}]   ;;  %s1040_s6 = inlined_call_operand.vmem [shape: bf16[4,64,32], index: 6, kind: input, shape index: {}]   ;;  %s1041_s7 = inlined_call_operand.hbm [shape: f32[16,32], index: 7, kind: output, shape index: {}]  }
   0x1   :  { %s13_s26 = sshll.u32 %s1034_s0, 4  ;;  %17 = sst [smem:[#allocation5]] %s1035_s1  ;;  %s14_s26 = int_to_ptr.vmem [resolvable:$true] %s13_s26 }
   0x2   :  { %16 = dma.vmem_to_smem %s14_s26, 16, %s908_s29, [#allocation3] }
   0x3   :  { %890 = dma.done.wait [#allocation3], 16 }
   0x4   :  { %891 = vsyncadd [#allocation3], 4294967280 }
   0x5   :  { %20 = sfence }
   0x6   :  { %21 = vsyncpa [#allocation7], 0  ;;  %s960_s30 = smov 0   ;;  %s962_s8 = smov 0  }
   0x7   :  { %s964_s9 = smov 0  }
   0x8 LB: > { %s740_s0 = sadd.s32 4294967295, %s906_s9   ;;  %s39_s1 = sadd.s32 1, %s902_s8  ;;  %s906_s9 = sphi %s964_s9, %s27_s9   ;;  %s902_s8 = sphi %s962_s8, %s1043_s8   ;;  %s898_s30 = sphi %s960_s30, %s1042_s30  }
   0x9   : > { %p40_p0 = scmp.ge.s32.totalorder %s39_s1, 4  ;;  %p744_p1 = scmp.ge.s32.totalorder %s906_s9, 1 }
   0xa   : > { %p329_p2 = scmp.lt.s32.totalorder %s906_s9, 5 }
   0xb   : > { %s1045_s1 = smov (%p40_p0, %s39_s1), 0 }
   0xc   : > { %p330_p3 = pnand %p744_p1, %p329_p2 }
   0xd   : > { %s404_s10 = sld [smem:[#allocation4 + %s898_s30]] (!%p330_p3)  ;;  %p463_p4 = scmp.eq.s32.totalorder (!%p330_p3), %s898_s30, 0 }
   0xe   : > { %333 = sbr.rel (%p330_p3) target bundleno = 344 (0x158), region = 40  ;;  %s420_s11 = sld [smem:[#allocation4 + %s898_s30]] (!%p330_p3) }
   0xf   : > { %s434_s12 = sld [smem:[#allocation4 + %s898_s30]] (!%p330_p3) }
  0x10   : > { %s446_s13 = sld [smem:[#allocation4 + %s898_s30]] (!%p330_p3) }
  0x13   : > { %p406_p5 = scmp.lt.s32.totalorder %s404_s10, 3  ;;  %vm468_vm0 = vcmask (%p463_p4), 261120   ;;  %v909_v0 = vmov (%p463_p4), 0.0  }
  0x14   : > { %p421_p6 = scmp.lt.s32.totalorder %s420_s11, 3  ;;  %469 = vst.msk [vmem:[#allocation2] sm:$0xff] (%p463_p4), %vm468_vm0, %v909_v0 }
  0x15   : > { %s1047_s10 = smov (!%p406_p5, %s404_s10), 3  ;;  %p435_p7 = scmp.lt.s32.totalorder %s434_s12, 3  ;;  %470 = vst.msk [vmem:[#allocation2 + $0x8] sm:$0xff] (%p463_p4), %vm468_vm0, %v909_v0 }
  0x16   : > { %s1049_s11 = smov (!%p421_p6, %s420_s11), 3  ;;  %s788_s14 = sshll.u32 %s1047_s10, 4 }
  0x17   : > { %s989_s17 = scalar_lea.vmem %s1037_s3, %s788_s14  ;;  %s789_s18 = sshll.u32 %s1049_s11, 4 }
  0x18   : > { %s428_s21 = scalar_lea.vmem %s1038_s4, %s789_s18  ;;  %p448_p8 = scmp.lt.s32.totalorder %s446_s13, 3 }
  0x19   : > { %s1051_s12 = smov (!%p435_p7, %s434_s12), 3  ;;  %467 = sbr.rel (!%p463_p4) target bundleno = 30 (0x1e), region = 44 }
  0x1a   : > { %s1053_s13 = smov (!%p448_p8, %s446_s13), 3  ;;  %s440_s24 = scalar_lea.vmem %s1039_s5, %s1051_s12 }
  0x1b   : > { %s790_s25 = sshll.u32 %s1053_s13, 5 }
  0x1c   : > { %s455_s28 = scalar_lea.vmem %s1040_s6, %s790_s25 }
  0x1e PF: > { %s471_s29 = sld [smem:[#allocation5]] }
  0x24   : > { %p752_p9 = scmp.ge.s32.totalorder %s898_s30, %s471_s29 }
  0x26   : > { %475 = sbr.rel (%p752_p9) target bundleno = 330 (0x14a), region = 48 }
  0x2b   : > { %v794_v1 = vld [vmem:[%s428_s21 + $0x8] sm:$0xff]  ;;  %v793_v2 = vld [vmem:[%s428_s21] sm:$0xff]  ;;  %vm503_vm1 = vcmask 261120   ;;  %v798_v4 = vld [vmem:[%s455_s28 + $0x18] sm:$0xff]  ;;  %v910_v9 = vmov 0   ;;  %vm558_vm2 = vcmask 523264  }
  0x2c   : > { %513 = vmatpush.bf16.msra.mxu0 %v794_v1  ;;  %v792_v3 = vld [vmem:[%s1036_s2] sm:$0xff]  ;;  %566 = vmatpush.bf16.msra.mxu1 %v798_v4  ;;  %v797_v5 = vld [vmem:[%s455_s28 + $0x10] sm:$0xff]  ;;  %v796_v6 = vld [vmem:[%s455_s28 + $0x8] sm:$0xff] }
  0x2d   : > { %v795_v7 = vld [vmem:[%s455_s28] sm:$0xff]  ;;  %836 = vset.pattern.permute.xlu0 %v910_v9  ;;  %v524_v10 = vld [vmem:[%s989_s17 + $0x8] sm:$0xff] }
  0x2e   : > { %v523_v8 = vld [vmem:[%s989_s17] sm:$0xff]  ;;  %v577_v26 = vld [vmem:[#allocation2 + $0x8] sm:$0xff] }
  0x2f   : > { %580 = vperm.xlu0 %836, %v523_v8   ;;  %v837_v12 = vld [vmem:[%s440_s24] ss:$0 sm:$0xff] }
  0x30   : > { %514 = vmatpush.bf16.msra.mxu0 %v793_v2  ;;  %567 = vmatpush.bf16.msra.mxu1 %v797_v5  ;;  %v576_v21 = vld [vmem:[#allocation2] sm:$0xff] }
  0x33   : > { %765 = vmatmul.msk.bf16.vlgmr.msra.gmra.mxu0 %vm503_vm1, %v792_v3 }
  0x34   : > { %568 = vmatpush.bf16.msra.mxu1 %v796_v6 }
  0x37   : > { %585 = vperm.xlu0 %836, %v524_v10  }
  0x38   : > { %569 = vmatpush.bf16.msra.mxu1 %v795_v7 }
  0xa1   : > { %v581_v19 = vpop.permute.xlu0 %580 }
  0xa9   : > { %v586_v24 = vpop.permute.xlu0 %585 }
  0xb0   : > { %v516_v11 = vpop.f32.mrf.mxu0 }
  0xb1   : > { %v517_v13 = vadd.f32 %v837_v12, %v516_v11 }
  0xb3   : > { %v521_v16 = vmax.f32 %v517_v13, 0.0 }
  0xb8   : > { %v518_v14 = vpop.f32.mrf.mxu0 }
  0xb9   : > { %v519_v15 = vadd.f32 %v837_v12, %v518_v14 }
  0xbb   : > { %v522_v17 = vmax.f32 %v519_v15, 0.0 }
  0xbd   : > { %v525_v18 = vpack.c.bf16 %v522_v17, %v521_v16 }
  0xbf   : > { %782 = vmatmul.msk.bf16.vlgmr.msra.gmra.mxu1 %vm558_vm2, %v525_v18 }
 0x13c   : > { %v571_v20 = vpop.f32.mrf.mxu1 }
 0x13d   : > { %v588_v22 = vmul.f32 %v581_v19, %v571_v20 }
 0x13f   : > { %v590_v23 = vadd.f32 %v588_v22, %v576_v21 }
 0x141   : > { %592 = vst.msk [vmem:[#allocation2] sm:$0xff] %vm503_vm1, %v590_v23 }
 0x144   : > { %v573_v25 = vpop.f32.mrf.mxu1 }
 0x145   : > { %v589_v27 = vmul.f32 %v586_v24, %v573_v25 }
 0x147   : > { %v591_v28 = vadd.f32 %v589_v27, %v577_v26 }
 0x149   : > { %593 = vst.msk [vmem:[#allocation2 + $0x8] sm:$0xff] %vm503_vm1, %v591_v28 }
 0x14a PF: > { %p594_p10 = scmp.eq.s32.totalorder %s898_s30, 3 }
 0x14b   : > { %v599_v29 = vld [vmem:[#allocation2] sm:$0xff] (%p594_p10)  ;;  %vm601_vm3 = vcmask (%p594_p10), 261120  }
 0x14c   : > { %598 = sbr.rel (!%p594_p10) target bundleno = 338 (0x152), region = 52  ;;  %602 = vst.msk [vmem:[#allocation6] sm:$0xff] (%p594_p10), %vm601_vm3, %v599_v29 }
 0x150   : > { %v600_v30 = vld [vmem:[#allocation2 + $0x8] sm:$0xff] (%p594_p10) }
 0x151   : > { %603 = vst.msk [vmem:[#allocation6 + $0x8] sm:$0xff] %vm601_vm3, %v600_v30 }
 0x152 PF: > { %p804_p11 = scmp.eq.s32.totalorder %s740_s0, 3  ;;  %s614_s16 = sshll.u32 %s1041_s7, 4  ;;  %s615_s16 = int_to_ptr.hbm [resolvable:$true] %s614_s16 }
 0x153   : > { %s911_s17 = smov [#allocation6]   ;;  %s912_s19 = smov 128  }
 0x154   : > { %s612_s18 = sshll.u32 %s911_s17, 4  ;;  %s913_s30 = smov 8   ;;  %s613_s18 = int_to_ptr.vmem [resolvable:$true] %s612_s18 }
 0x155   : > { %801 = dma.vmem_to_hbm [thread:$0]  (%p804_p11), %s613_s18, 256, %s615_s16, [#allocation7], %s912_s19, %s912_s19, %s913_s30  }
 0x156   : > { %893 = dma.done.wait (%p804_p11), [#allocation7], 256  }
 0x157   : > { %895 = vsyncadd (%p804_p11), [#allocation7], 4294967040 }
 0x158 PF: > { %s27_s9 = sadd.s32 1, %s906_s9   ;;  %s1042_s30 = smov %s902_s8 }
 0x159   : > { %p24_p12 = scmp.ge.s32.totalorder %s27_s9, 6   ;;  %s1043_s8 = smov %s1045_s1 }
 0x15b   :  { %26 = sbr.rel (!%p24_p12) target bundleno = 8 (0x8), region = 92 }
 0x160   :  { %631 = vsyncpa [#allocation7], 1 }
 0x161   :  { %633 = vsyncpa [#allocation7 + $0x1], 1 }

</bundles_post_ra>
